<compile_context>
chip_gen: v7x
topology: tpu7x:2x2x1
jax: 0.10.0
libtpu: 0.0.40
codegen_flags: <defaults>
</compile_context>

<pallas_src>
import functools

import numpy as np
import jax
import jax.numpy as jnp
from jax.experimental import pallas as pl
from jax.experimental.pallas import tpu as pltpu


def _triu_gram_kernel(x_ref, o_ref, *, hidden_dim, pairs):
    """x_ref: (TB, N*M) f32 lane-dense block.  o_ref: (TB, P) f32, P = N*(N-1)/2.

    For every strict-upper-triangle pair (i, j):
        out[:, p] = sum_m x[:, i*M + m] * x[:, j*M + m]
    i.e. the (i, j) entry of the per-row Gram matrix, computed as a VPU elementwise
    multiply followed by an XLU lane reduction (K = 32 is far too small for the MXU).
    """
    m = hidden_dim
    # Static lane slices of the flat row; each asset's M-wide feature chunk.
    # (Loads are cheap; the compiler CSEs / schedules the reuse across pairs.)
    xs = [x_ref[:, i * m:(i + 1) * m] for i in range(max(max(p) for p in pairs) + 1)]
    cols = []
    for (i, j) in pairs:
        prod = xs[i] * xs[j]                                   # (TB, M) on the VPU
        cols.append(jnp.sum(prod, axis=-1, keepdims=True))     # (TB, 1) lane reduce
    # Single coherent store of the fused triu vector for this tile.
    o_ref[...] = jnp.concatenate(cols, axis=-1)                # (TB, P)


def _choose_tile(batch, tb_max):
    """Pick (TB, B_pad).  Prefer TB == B (single step) or a divisor of B (no jnp.pad
    HBM copy); fall back to padding only if no reasonably large divisor exists."""
    if batch <= tb_max:
        return batch, batch
    tb_cap = tb_max - (tb_max % 8)
    for tb in range(tb_cap, 0, -8):          # multiples of 8 keep the block legal
        if batch % tb == 0:
            if tb >= max(8, tb_cap // 4):
                return tb, batch
            break
    b_pad = ((batch + tb_cap - 1) // tb_cap) * tb_cap
    return tb_cap, b_pad


def _triu_self_attention(x_flat, hidden_dim, pairs, tb_max=1024):
    """x_flat: (B, N*M) f32  ->  (B, P) f32 strict-upper-triangle Gram values."""
    batch, feat = x_flat.shape
    num_pairs = len(pairs)
    tb, b_pad = _choose_tile(batch, tb_max)
    if b_pad != batch:
        # TODO(synk): replace with a masked final grid step to avoid the extra HBM
        # copy for very large, oddly-sized batches.
        x_flat = jnp.pad(x_flat, ((0, b_pad - batch), (0, 0)))

    kernel = functools.partial(_triu_gram_kernel, hidden_dim=hidden_dim, pairs=pairs)
    out = pl.pallas_call(
        kernel,
        out_shape=jax.ShapeDtypeStruct((b_pad, num_pairs), jnp.float32),
        grid=(b_pad // tb,),
        in_specs=[pl.BlockSpec((tb, feat), lambda b: (b, 0))],
        out_specs=pl.BlockSpec((tb, num_pairs), lambda b: (b, 0)),
        compiler_params=pltpu.CompilerParams(
            dimension_semantics=("parallel",),        # shards across TCs on v7x
            vmem_limit_bytes=32 * 1024 * 1024,        # explicit, safe on v5e/v6e/v7x
        ),
    )(x_flat)
    return out[:batch] if b_pad != batch else out


class ParallelSelectionPallas:
    """JAX/Pallas port of the PyTorch ParallelSelection policy network.

    forward(features):
      features -> view as (B, asset_num, hidden_dim)
      S = bmm(features, features^T)
      return S[:, triu_i, triu_j]   # strict upper triangle, torch.triu_indices order
    All of the above is fused into a single Pallas kernel operating on the flat
    (B, asset_num*hidden_dim) layout.
    """

    def __init__(self, feature_dim: int, hidden_dim: int, asset_num: int,
                 last_layer_dim_pi: int = 60, **kwargs):
        self.feature_dim = feature_dim
        self.hidden_dim = hidden_dim
        self.asset_num = asset_num
        self.last_layer_dim_pi = last_layer_dim_pi
        # Static strict-upper-triangle pairs, row-major — identical ordering to
        # torch.triu_indices(N, N, 1).
        iu, ju = np.triu_indices(asset_num, k=1)
        self._pairs = tuple(zip(iu.tolist(), ju.tolist()))

    def __call__(self, features: jnp.ndarray) -> jnp.ndarray:
        # Keep the natural flat (B, N*M) layout — identical HBM bytes to the
        # PyTorch (B, N, M) view, but lane-dense (256 = 2 full 128-lane tiles).
        x = features.reshape(-1, self.asset_num * self.hidden_dim).astype(jnp.float32)
        return _triu_self_attention(x, self.hidden_dim, self._pairs)


if __name__ == "__main__":
    # Small shapes consistent with the module: N assets, M hidden dims per asset.
    batch = 2
    asset_num = 8
    hidden_dim = 32
    feature_dim = asset_num * hidden_dim

    key = jax.random.PRNGKey(0)
    features = jax.random.normal(key, (batch, feature_dim), dtype=jnp.float32)

    model = ParallelSelectionPallas(
        feature_dim=feature_dim, hidden_dim=hidden_dim, asset_num=asset_num
    )
    out = model(features)
    out = jax.block_until_ready(out)

    # Sanity check against a pure-JAX reference of the exact PyTorch semantics.
    x = features.reshape(-1, asset_num, hidden_dim)
    s_ref = jnp.einsum("bnm,bkm->bnk", x, x)
    iu, ju = np.triu_indices(asset_num, k=1)
    ref = s_ref[:, iu, ju]
    assert out.shape == (batch, asset_num * (asset_num - 1) // 2), out.shape
    np.testing.assert_allclose(np.asarray(out), np.asarray(ref), rtol=1e-5, atol=1e-5)

    print("KERNEL_OK")
</pallas_src>

<mosaic_0001>
module attributes {stable_mosaic.version = 11 : i64} {
  func.func @_triu_gram_kernel(%arg0: i32, %arg1: memref<2x256xf32, #tpu.memory_space<vmem>>, %arg2: memref<2x28xf32, #tpu.memory_space<vmem>>) attributes {dimension_semantics = [#tpu.dimension_semantics<parallel>], iteration_bounds = array<i64: 1>, scalar_prefetch = 0 : i64, scratch_operands = 0 : i64, tpu.core_type = #tpu.core_type<tc>, window_params = [{transform_indices = @transform_0, window_bounds = array<i64: 2, 256>}, {transform_indices = @transform_1, window_bounds = array<i64: 2, 28>}]} {
    %c0 = arith.constant 0 : index
    %c0_0 = arith.constant 0 : index
    %0 = vector.load %arg1[%c0, %c0_0] : memref<2x256xf32, #tpu.memory_space<vmem>>, vector<2x32xf32>
    %c0_1 = arith.constant 0 : index
    %c32 = arith.constant 32 : index
    %1 = vector.load %arg1[%c0_1, %c32] : memref<2x256xf32, #tpu.memory_space<vmem>>, vector<2x32xf32>
    %c0_2 = arith.constant 0 : index
    %c64 = arith.constant 64 : index
    %2 = vector.load %arg1[%c0_2, %c64] : memref<2x256xf32, #tpu.memory_space<vmem>>, vector<2x32xf32>
    %c0_3 = arith.constant 0 : index
    %c96 = arith.constant 96 : index
    %3 = vector.load %arg1[%c0_3, %c96] : memref<2x256xf32, #tpu.memory_space<vmem>>, vector<2x32xf32>
    %c0_4 = arith.constant 0 : index
    %c128 = arith.constant 128 : index
    %4 = vector.load %arg1[%c0_4, %c128] : memref<2x256xf32, #tpu.memory_space<vmem>>, vector<2x32xf32>
    %c0_5 = arith.constant 0 : index
    %c160 = arith.constant 160 : index
    %5 = vector.load %arg1[%c0_5, %c160] : memref<2x256xf32, #tpu.memory_space<vmem>>, vector<2x32xf32>
    %c0_6 = arith.constant 0 : index
    %c192 = arith.constant 192 : index
    %6 = vector.load %arg1[%c0_6, %c192] : memref<2x256xf32, #tpu.memory_space<vmem>>, vector<2x32xf32>
    %c0_7 = arith.constant 0 : index
    %c224 = arith.constant 224 : index
    %7 = vector.load %arg1[%c0_7, %c224] : memref<2x256xf32, #tpu.memory_space<vmem>>, vector<2x32xf32>
    %8 = arith.mulf %0, %1 : vector<2x32xf32>
    %cst = arith.constant dense<0.000000e+00> : vector<2xf32>
    %9 = vector.multi_reduction <add>, %8, %cst [1] : vector<2x32xf32> to vector<2xf32>
    %10 = vector.shape_cast %9 : vector<2xf32> to vector<2x1xf32>
    %11 = arith.mulf %0, %2 : vector<2x32xf32>
    %cst_8 = arith.constant dense<0.000000e+00> : vector<2xf32>
    %12 = vector.multi_reduction <add>, %11, %cst_8 [1] : vector<2x32xf32> to vector<2xf32>
    %13 = vector.shape_cast %12 : vector<2xf32> to vector<2x1xf32>
    %14 = arith.mulf %0, %3 : vector<2x32xf32>
    %cst_9 = arith.constant dense<0.000000e+00> : vector<2xf32>
    %15 = vector.multi_reduction <add>, %14, %cst_9 [1] : vector<2x32xf32> to vector<2xf32>
    %16 = vector.shape_cast %15 : vector<2xf32> to vector<2x1xf32>
    %17 = arith.mulf %0, %4 : vector<2x32xf32>
    %cst_10 = arith.constant dense<0.000000e+00> : vector<2xf32>
    %18 = vector.multi_reduction <add>, %17, %cst_10 [1] : vector<2x32xf32> to vector<2xf32>
    %19 = vector.shape_cast %18 : vector<2xf32> to vector<2x1xf32>
    %20 = arith.mulf %0, %5 : vector<2x32xf32>
    %cst_11 = arith.constant dense<0.000000e+00> : vector<2xf32>
    %21 = vector.multi_reduction <add>, %20, %cst_11 [1] : vector<2x32xf32> to vector<2xf32>
    %22 = vector.shape_cast %21 : vector<2xf32> to vector<2x1xf32>
    %23 = arith.mulf %0, %6 : vector<2x32xf32>
    %cst_12 = arith.constant dense<0.000000e+00> : vector<2xf32>
    %24 = vector.multi_reduction <add>, %23, %cst_12 [1] : vector<2x32xf32> to vector<2xf32>
    %25 = vector.shape_cast %24 : vector<2xf32> to vector<2x1xf32>
    %26 = arith.mulf %0, %7 : vector<2x32xf32>
    %cst_13 = arith.constant dense<0.000000e+00> : vector<2xf32>
    %27 = vector.multi_reduction <add>, %26, %cst_13 [1] : vector<2x32xf32> to vector<2xf32>
    %28 = vector.shape_cast %27 : vector<2xf32> to vector<2x1xf32>
    %29 = arith.mulf %1, %2 : vector<2x32xf32>
    %cst_14 = arith.constant dense<0.000000e+00> : vector<2xf32>
    %30 = vector.multi_reduction <add>, %29, %cst_14 [1] : vector<2x32xf32> to vector<2xf32>
    %31 = vector.shape_cast %30 : vector<2xf32> to vector<2x1xf32>
    %32 = arith.mulf %1, %3 : vector<2x32xf32>
    %cst_15 = arith.constant dense<0.000000e+00> : vector<2xf32>
    %33 = vector.multi_reduction <add>, %32, %cst_15 [1] : vector<2x32xf32> to vector<2xf32>
    %34 = vector.shape_cast %33 : vector<2xf32> to vector<2x1xf32>
    %35 = arith.mulf %1, %4 : vector<2x32xf32>
    %cst_16 = arith.constant dense<0.000000e+00> : vector<2xf32>
    %36 = vector.multi_reduction <add>, %35, %cst_16 [1] : vector<2x32xf32> to vector<2xf32>
    %37 = vector.shape_cast %36 : vector<2xf32> to vector<2x1xf32>
    %38 = arith.mulf %1, %5 : vector<2x32xf32>
    %cst_17 = arith.constant dense<0.000000e+00> : vector<2xf32>
    %39 = vector.multi_reduction <add>, %38, %cst_17 [1] : vector<2x32xf32> to vector<2xf32>
    %40 = vector.shape_cast %39 : vector<2xf32> to vector<2x1xf32>
    %41 = arith.mulf %1, %6 : vector<2x32xf32>
    %cst_18 = arith.constant dense<0.000000e+00> : vector<2xf32>
    %42 = vector.multi_reduction <add>, %41, %cst_18 [1] : vector<2x32xf32> to vector<2xf32>
    %43 = vector.shape_cast %42 : vector<2xf32> to vector<2x1xf32>
    %44 = arith.mulf %1, %7 : vector<2x32xf32>
    %cst_19 = arith.constant dense<0.000000e+00> : vector<2xf32>
    %45 = vector.multi_reduction <add>, %44, %cst_19 [1] : vector<2x32xf32> to vector<2xf32>
    %46 = vector.shape_cast %45 : vector<2xf32> to vector<2x1xf32>
    %47 = arith.mulf %2, %3 : vector<2x32xf32>
    %cst_20 = arith.constant dense<0.000000e+00> : vector<2xf32>
    %48 = vector.multi_reduction <add>, %47, %cst_20 [1] : vector<2x32xf32> to vector<2xf32>
    %49 = vector.shape_cast %48 : vector<2xf32> to vector<2x1xf32>
    %50 = arith.mulf %2, %4 : vector<2x32xf32>
    %cst_21 = arith.constant dense<0.000000e+00> : vector<2xf32>
    %51 = vector.multi_reduction <add>, %50, %cst_21 [1] : vector<2x32xf32> to vector<2xf32>
    %52 = vector.shape_cast %51 : vector<2xf32> to vector<2x1xf32>
    %53 = arith.mulf %2, %5 : vector<2x32xf32>
    %cst_22 = arith.constant dense<0.000000e+00> : vector<2xf32>
    %54 = vector.multi_reduction <add>, %53, %cst_22 [1] : vector<2x32xf32> to vector<2xf32>
    %55 = vector.shape_cast %54 : vector<2xf32> to vector<2x1xf32>
    %56 = arith.mulf %2, %6 : vector<2x32xf32>
    %cst_23 = arith.constant dense<0.000000e+00> : vector<2xf32>
    %57 = vector.multi_reduction <add>, %56, %cst_23 [1] : vector<2x32xf32> to vector<2xf32>
    %58 = vector.shape_cast %57 : vector<2xf32> to vector<2x1xf32>
    %59 = arith.mulf %2, %7 : vector<2x32xf32>
    %cst_24 = arith.constant dense<0.000000e+00> : vector<2xf32>
    %60 = vector.multi_reduction <add>, %59, %cst_24 [1] : vector<2x32xf32> to vector<2xf32>
    %61 = vector.shape_cast %60 : vector<2xf32> to vector<2x1xf32>
    %62 = arith.mulf %3, %4 : vector<2x32xf32>
    %cst_25 = arith.constant dense<0.000000e+00> : vector<2xf32>
    %63 = vector.multi_reduction <add>, %62, %cst_25 [1] : vector<2x32xf32> to vector<2xf32>
    %64 = vector.shape_cast %63 : vector<2xf32> to vector<2x1xf32>
    %65 = arith.mulf %3, %5 : vector<2x32xf32>
    %cst_26 = arith.constant dense<0.000000e+00> : vector<2xf32>
    %66 = vector.multi_reduction <add>, %65, %cst_26 [1] : vector<2x32xf32> to vector<2xf32>
    %67 = vector.shape_cast %66 : vector<2xf32> to vector<2x1xf32>
    %68 = arith.mulf %3, %6 : vector<2x32xf32>
    %cst_27 = arith.constant dense<0.000000e+00> : vector<2xf32>
    %69 = vector.multi_reduction <add>, %68, %cst_27 [1] : vector<2x32xf32> to vector<2xf32>
    %70 = vector.shape_cast %69 : vector<2xf32> to vector<2x1xf32>
    %71 = arith.mulf %3, %7 : vector<2x32xf32>
    %cst_28 = arith.constant dense<0.000000e+00> : vector<2xf32>
    %72 = vector.multi_reduction <add>, %71, %cst_28 [1] : vector<2x32xf32> to vector<2xf32>
    %73 = vector.shape_cast %72 : vector<2xf32> to vector<2x1xf32>
    %74 = arith.mulf %4, %5 : vector<2x32xf32>
    %cst_29 = arith.constant dense<0.000000e+00> : vector<2xf32>
    %75 = vector.multi_reduction <add>, %74, %cst_29 [1] : vector<2x32xf32> to vector<2xf32>
    %76 = vector.shape_cast %75 : vector<2xf32> to vector<2x1xf32>
    %77 = arith.mulf %4, %6 : vector<2x32xf32>
    %cst_30 = arith.constant dense<0.000000e+00> : vector<2xf32>
    %78 = vector.multi_reduction <add>, %77, %cst_30 [1] : vector<2x32xf32> to vector<2xf32>
    %79 = vector.shape_cast %78 : vector<2xf32> to vector<2x1xf32>
    %80 = arith.mulf %4, %7 : vector<2x32xf32>
    %cst_31 = arith.constant dense<0.000000e+00> : vector<2xf32>
    %81 = vector.multi_reduction <add>, %80, %cst_31 [1] : vector<2x32xf32> to vector<2xf32>
    %82 = vector.shape_cast %81 : vector<2xf32> to vector<2x1xf32>
    %83 = arith.mulf %5, %6 : vector<2x32xf32>
    %cst_32 = arith.constant dense<0.000000e+00> : vector<2xf32>
    %84 = vector.multi_reduction <add>, %83, %cst_32 [1] : vector<2x32xf32> to vector<2xf32>
    %85 = vector.shape_cast %84 : vector<2xf32> to vector<2x1xf32>
    %86 = arith.mulf %5, %7 : vector<2x32xf32>
    %cst_33 = arith.constant dense<0.000000e+00> : vector<2xf32>
    %87 = vector.multi_reduction <add>, %86, %cst_33 [1] : vector<2x32xf32> to vector<2xf32>
    %88 = vector.shape_cast %87 : vector<2xf32> to vector<2x1xf32>
    %89 = arith.mulf %6, %7 : vector<2x32xf32>
    %cst_34 = arith.constant dense<0.000000e+00> : vector<2xf32>
    %90 = vector.multi_reduction <add>, %89, %cst_34 [1] : vector<2x32xf32> to vector<2xf32>
    %91 = vector.shape_cast %90 : vector<2xf32> to vector<2x1xf32>
    %92 = tpu.concatenate %10, %13, %16, %19, %22, %25, %28, %31, %34, %37, %40, %43, %46, %49, %52, %55 in 1 : vector<2x1xf32>, vector<2x1xf32>, vector<2x1xf32>, vector<2x1xf32>, vector<2x1xf32>, vector<2x1xf32>, vector<2x1xf32>, vector<2x1xf32>, vector<2x1xf32>, vector<2x1xf32>, vector<2x1xf32>, vector<2x1xf32>, vector<2x1xf32>, vector<2x1xf32>, vector<2x1xf32>, vector<2x1xf32> -> vector<2x16xf32>
    %93 = tpu.concatenate %58, %61, %64, %67, %70, %73, %76, %79, %82, %85, %88, %91 in 1 : vector<2x1xf32>, vector<2x1xf32>, vector<2x1xf32>, vector<2x1xf32>, vector<2x1xf32>, vector<2x1xf32>, vector<2x1xf32>, vector<2x1xf32>, vector<2x1xf32>, vector<2x1xf32>, vector<2x1xf32>, vector<2x1xf32> -> vector<2x12xf32>
    %94 = tpu.concatenate %92, %93 in 1 : vector<2x16xf32>, vector<2x12xf32> -> vector<2x28xf32>
    %c0_35 = arith.constant 0 : index
    %c0_36 = arith.constant 0 : index
    %95 = vector.load %arg2[%c0_35, %c0_36] : memref<2x28xf32, #tpu.memory_space<vmem>>, vector<2x28xf32>
    tpu.vector_store %arg2[%c0_35, %c0_36], %94 {strides = array<i32>} : memref<2x28xf32, #tpu.memory_space<vmem>>, vector<2x28xf32>,
    return
  }
  func.func @transform_0(%arg0: i32) -> (i32, i32) {
    %c0_i32 = arith.constant 0 : i32
    %c0_i32_0 = arith.constant 0 : i32
    return %arg0, %c0_i32 : i32, i32
  }
  func.func @transform_1(%arg0: i32) -> (i32, i32) {
    %c0_i32 = arith.constant 0 : i32
    %c0_i32_0 = arith.constant 0 : i32
    return %arg0, %c0_i32 : i32, i32
  }
}

</mosaic_0001>

<bundles_post_ra>
// kernel: tpu_custom_call.1
= control target key start
LH: loop header
LB: loop body
LE: loop exit
PB: predicated region body
PF: predicated region fallthrough
CT: control target
= control target key end

     0   :  { %6 = vsyncpa [#allocation3], 0  ;;  %s539_s0 = inlined_call_operand.hbm [shape: f32[2,256], index: 0, kind: input, shape index: {}]   ;;  %s540_s1 = inlined_call_operand.hbm [shape: f32[2,28], index: 1, kind: output, shape index: {}]  }
   0x1   :  { %7 = vsyncpa [#allocation4], 0  ;;  %s375_s6 = smov [#allocation2]   ;;  %s327_s10 = scalar_lea.hbm %s539_s0, 64 }
   0x2   :  { %s14_s7 = sshll.u32 %s375_s6, 4  ;;  %p328_p0 = scmp.ne.s32.totalorder %s539_s0, %s327_s10  ;;  %s15_s7 = int_to_ptr.vmem [resolvable:$true] %s14_s7 }
   0x3   :  { %p331_p1 = scmp.lt.u32.totalorder %s327_s10, %s539_s0 }
   0x5   :  { %p333_p2 = pnand %p331_p1, %p328_p0 }
   0x7   :  { %336 = shalt.err (!%p333_p2)
}
   0x8   :  { %s337_s15 = scalar_lea.vmem %s15_s7, 64  ;;  %p342_p4 = scmp.lt.s32.totalorder %s15_s7, %s15_s7 }
   0x9   :  { %p338_p3 = scmp.ne.s32.totalorder %s15_s7, %s337_s15  ;;  %p343_p5 = scmp.lt.s32.totalorder %s337_s15, %s337_s15 }
   0xb   :  { %p344_p6 = por %p343_p5, %p342_p4 }
   0xd   :  { %p345_p7 = pnand %p344_p6, %p338_p3 }
   0xf   :  { %348 = shalt.err (!%p345_p7)
}
  0x10   :  { %17 = dma.hbm_to_vmem [thread:$0]  %s539_s0, 64, %s15_s7, [#allocation3]  }
  0x11   :  { %371 = dma.done.wait [#allocation3], 64  }
  0x12   :  { %372 = vsyncadd [#allocation3], 4294967232  ;;  %v21_v0 = vld [vmem:[#allocation2] sm:$0x3]  ;;  %s376_s18 = smov 64   ;;  %s377_s19 = smov 96   ;;  %v76_v25 = vlaneseq }
  0x13   :  { %32 = vrot.lane.b32.xlu1 %v21_v0, %s376_s18  ;;  %24 = vrot.lane.b32.xlu0 %v21_v0, %s377_s19  ;;  %s378_s20 = smov 32   ;;  %v407_v1 = vld [vmem:[#allocation2 + $0x2] sm:$0x3]  ;;  %vm28_vm0 = vcmask 254976   ;;  %v379_v23 = vmov 1983009808  }
  0x14   :  { %v46_v2 = vmul.f32 %v407_v1, %v21_v0  ;;  %v74_v24 = vunpack.c.l.s4 %v379_v23  ;;  %v77_v27 = vshrl.u32 %v76_v25, 7  ;;  %vm256_vm1 = vcmask 7168   ;;  %s380_s0 = smov 16   ;;  %s381_s21 = smov [#allocation5]  }
  0x15   :  { %vm258_vm2 = vcmask 15360   ;;  %vm260_vm3 = vcmask 23552   ;;  %vm262_vm4 = vcmask 31744   ;;  %vm264_vm5 = vcmask 39936   ;;  %s311_s22 = sshll.u32 %s381_s21, 4  ;;  %s312_s22 = int_to_ptr.vmem [resolvable:$true] %s311_s22 }
  0x16   :  { %v47_v3 = vsel %vm28_vm0, %v46_v2, 0.0  ;;  %v75_v26 = vunpack.c.0.s8 %v74_v24  ;;  %vm266_vm6 = vcmask 48128   ;;  %vm268_vm7 = vcmask 56320   ;;  %s349_s23 = scalar_lea.vmem %s312_s22, 32  ;;  %p354_p9 = scmp.lt.s32.totalorder %s312_s22, %s312_s22 }
  0x17   :  { %39 = vrot.lane.b32.xlu0 %v21_v0, %s378_s20  ;;  %vm270_vm8 = vcmask 64512   ;;  %vm272_vm9 = vcmask 72704   ;;  %vm274_vm10 = vcmask 80896   ;;  %vm276_vm11 = vcmask 89088   ;;  %p350_p8 = scmp.ne.s32.totalorder %s312_s22, %s349_s23  ;;  %p355_p10 = scmp.lt.s32.totalorder %s349_s23, %s349_s23 }
  0x18   :  { %v432_v28 = vsub.s32 %v75_v26, %v77_v27  ;;  %vm278_vm12 = vcmask 97280   ;;  %vm280_vm13 = vcmask 105472   ;;  %vm282_vm14 = vcmask 113664  }
  0x19   :  { %vm284_vm15 = vcmask 121856   ;;  %p356_p11 = por %p355_p10, %p354_p9 }
  0x1a   :  { %v449_v33 = vrot.slane %v46_v2, %v432_v28 }
  0x1b   :  { %65 = vrot.lane.b32.xlu0 %v407_v1, %s378_s20  ;;  %p357_p12 = pnand %p356_p11, %p350_p8 }
  0x37   :  { %48 = vadd.xlane.f32.xlu1 %v47_v3 }
  0x48   :  { %51 = vrot.lane.b32.xlu1 %v407_v1, %s377_s19 }
  0x4c   :  { %58 = vrot.lane.b32.xlu1 %v407_v1, %s376_s18 }
  0x85   :  { %v33_v4 = vpop.permute.xlu1 %32  ;;  %v25_v5 = vpop.permute.xlu0 %24 }
  0x86   :  { %v35_v6 = vmul.f32 %v33_v4, %v21_v0  ;;  %v27_v7 = vmul.f32 %v25_v5, %v21_v0 }
  0x88   :  { %v29_v8 = vsel %vm28_vm0, %v27_v7, 0.0  ;;  %v36_v9 = vsel %vm28_vm0, %v35_v6, 0.0  ;;  %v79_v30 = vrot.slane %v27_v7, %v432_v28  ;;  %v93_v32 = vrot.slane %v35_v6, %v432_v28 }
  0x89   :  { %30 = vadd.xlane.f32.xlu0 %v29_v8  ;;  %v40_v10 = vpop.permute.xlu0 %39  ;;  %37 = vadd.xlane.f32.xlu1 %v36_v9 }
  0x8a   :  { %v42_v11 = vmul.f32 %v40_v10, %v21_v0 }
  0x8c   :  { %v43_v12 = vsel %vm28_vm0, %v42_v11, 0.0 }
  0x8d   :  { %44 = vadd.xlane.f32.xlu1 %v43_v12  ;;  %v423_v16 = vpop.permute.xlu0 %65 }
  0x8e   :  { %v68_v20 = vmul.f32 %v423_v16, %v21_v0 }
  0x90   :  { %v69_v22 = vsel %vm28_vm0, %v68_v20, 0.0  ;;  %v435_v29 = vrot.slane %v68_v20, %v432_v28 }
  0xc4   :  { %v49_v13 = vpop.xlane.xlu1 %48 }
  0xc8   :  { %v420_v14 = vpop.permute.xlu1 %51 }
  0xc9   :  { %v54_v15 = vmul.f32 %v420_v14, %v21_v0  ;;  %v210_v27 = vmul.f32 %v420_v14, %v407_v1 }
  0xcb   :  { %v55_v17 = vsel %vm28_vm0, %v54_v15, 0.0  ;;  %v441_v31 = vrot.slane %v54_v15, %v432_v28 }
  0xcc   :  { %56 = vadd.xlane.f32.xlu0 %v55_v17  ;;  %v426_v18 = vpop.permute.xlu1 %58 }
  0xcd   :  { %v61_v19 = vmul.f32 %v426_v18, %v21_v0 }
  0xcf   :  { %v62_v21 = vsel %vm28_vm0, %v61_v19, 0.0  ;;  %v149_v55 = vrot.slane %v61_v19, %v432_v28 }
  0xd0   :  { %63 = vadd.xlane.f32.xlu1 %v62_v21 }
  0xd4   :  { %70 = vadd.xlane.f32.xlu1 %v69_v22 }
  0xe2   :  { %108 = vrot.lane.b32.xlu0 %v435_v29, %s377_s19 }
  0xe5   :  { %80 = vrot.lane.b32.xlu1 %v79_v30, %s377_s19 }
  0xe6   :  { %136 = vrot.lane.b32.xlu0 %v441_v31, %s377_s19 }
  0xe9   :  { %94 = vrot.lane.b32.xlu1 %v93_v32, %s377_s19  ;;  %v214_v32 = vmul.f32 %v426_v18, %v407_v1 }
  0xeb   :  { %v243_v14 = vrot.slane %v214_v32, %v432_v28 }
  0xed   :  { %122 = vrot.lane.b32.xlu1 %v449_v33, %s377_s19 }
 0x116   :  { %v38_v34 = vpop.xlane.xlu1 %37  ;;  %v31_v35 = vpop.xlane.xlu0 %30 }
 0x117   :  { %v257_v37 = vsel %vm256_vm1, %v31_v35, %v38_v34 }
 0x11a   :  { %v45_v36 = vpop.xlane.xlu1 %44 }
 0x11b   :  { %v259_v38 = vsel %vm258_vm2, %v257_v37, %v45_v36 }
 0x11c   :  { %v261_v40 = vsel %vm260_vm3, %v259_v38, %v49_v13 }
 0x159   :  { %v57_v39 = vpop.xlane.xlu0 %56 }
 0x15a   :  { %v263_v41 = vsel %vm262_vm4, %v261_v40, %v57_v39 }
 0x15d   :  { %v64_v42 = vpop.xlane.xlu1 %63  ;;  %v109_v46 = vpop.permute.xlu0 %108 }
 0x15e   :  { %v265_v43 = vsel %vm264_vm5, %v263_v41, %v64_v42  ;;  %v111_v50 = vsel %vm28_vm0, %v109_v46, 0.0 }
 0x161   :  { %v71_v44 = vpop.xlane.xlu1 %70  ;;  %v137_v51 = vpop.permute.xlu0 %136 }
 0x162   :  { %v267_v45 = vsel %vm266_vm6, %v265_v43, %v71_v44  ;;  %v139_v53 = vsel %vm28_vm0, %v137_v51, 0.0  ;;  %v215_v44 = vsel %vm28_vm0, %v214_v32, 0.0 }
 0x165   :  { %v81_v47 = vpop.permute.xlu1 %80 }
 0x166   :  { %v83_v48 = vsel %vm28_vm0, %v81_v47, 0.0 }
 0x167   :  { %84 = vadd.xlane.f32.xlu0 %v83_v48 }
 0x169   :  { %v95_v49 = vpop.permute.xlu1 %94 }
 0x16a   :  { %v97_v56 = vsel %vm28_vm0, %v95_v49, 0.0 }
 0x16b   :  { %112 = vadd.xlane.f32.xlu0 %v111_v50 }
 0x16d   :  { %v123_v52 = vpop.permute.xlu1 %122 }
 0x16e   :  { %v125_v54 = vsel %vm28_vm0, %v123_v52, 0.0 }
 0x16f   :  { %140 = vadd.xlane.f32.xlu0 %v139_v53  ;;  %126 = vadd.xlane.f32.xlu1 %v125_v54 }
 0x180   :  { %150 = vrot.lane.b32.xlu1 %v149_v55, %s377_s19 }
 0x185   :  { %156 = vrot.lane.b32.xlu0 %v79_v30, %s376_s18  ;;  %v229_v30 = vrot.slane %v210_v27, %v432_v28  ;;  %v218_v28 = vmul.f32 %v423_v16, %v407_v1 }
 0x187   :  { %v219_v41 = vsel %vm28_vm0, %v218_v28, 0.0 }
 0x1a4   :  { %98 = vadd.xlane.f32.xlu1 %v97_v56 }
 0x1f4   :  { %v85_v57 = vpop.xlane.xlu0 %84 }
 0x1f5   :  { %v269_v58 = vsel %vm268_vm7, %v267_v45, %v85_v57 }
 0x1f8   :  { %v113_v59 = vpop.xlane.xlu0 %112 }
 0x1fc   :  { %v141_v60 = vpop.xlane.xlu0 %140  ;;  %v127_v61 = vpop.xlane.xlu1 %126 }
 0x200   :  { %v157_v62 = vpop.permute.xlu0 %156  ;;  %v151_v63 = vpop.permute.xlu1 %150 }
 0x201   :  { %v159_v0 = vsel %vm28_vm0, %v157_v62, 0.0  ;;  %v153_v2 = vsel %vm28_vm0, %v151_v63, 0.0 }
 0x202   :  { %160 = vadd.xlane.f32.xlu0 %v159_v0  ;;  %154 = vadd.xlane.f32.xlu1 %v153_v2 }
 0x213   :  { %162 = vrot.lane.b32.xlu1 %v149_v55, %s376_s18 }
 0x218   :  { %168 = vrot.lane.b32.xlu0 %v435_v29, %s376_s18 }
 0x231   :  { %v99_v3 = vpop.xlane.xlu1 %98 }
 0x232   :  { %v271_v4 = vsel %vm270_vm8, %v269_v58, %v99_v3 }
 0x233   :  { %v273_v5 = vsel %vm272_vm9, %v271_v4, %v113_v59 }
 0x234   :  { %v275_v6 = vsel %vm274_vm10, %v273_v5, %v127_v61 }
 0x235   :  { %v277_v7 = vsel %vm276_vm11, %v275_v6, %v141_v60 }
 0x28f   :  { %v161_v8 = vpop.xlane.xlu0 %160  ;;  %v155_v9 = vpop.xlane.xlu1 %154 }
 0x290   :  { %v279_v10 = vsel %vm278_vm12, %v277_v7, %v155_v9 }
 0x291   :  { %v281_v11 = vsel %vm280_vm13, %v279_v10, %v161_v8 }
 0x293   :  { %v169_v12 = vpop.permute.xlu0 %168  ;;  %v163_v13 = vpop.permute.xlu1 %162 }
 0x294   :  { %v171_v15 = vsel %vm28_vm0, %v169_v12, 0.0  ;;  %v165_v17 = vsel %vm28_vm0, %v163_v13, 0.0 }
 0x295   :  { %172 = vadd.xlane.f32.xlu0 %v171_v15  ;;  %166 = vadd.xlane.f32.xlu1 %v165_v17 }
 0x2a6   :  { %174 = vrot.lane.b32.xlu1 %v449_v33, %s376_s18 }
 0x2ab   :  { %180 = vrot.lane.b32.xlu0 %v441_v31, %s376_s18 }
 0x322   :  { %v173_v19 = vpop.xlane.xlu0 %172  ;;  %v167_v20 = vpop.xlane.xlu1 %166 }
 0x323   :  { %v283_v21 = vsel %vm282_vm14, %v281_v11, %v167_v20 }
 0x324   :  { %v483_v22 = vsel %vm284_vm15, %v283_v21, %v173_v19 }
 0x326   :  { %v181_v23 = vpop.permute.xlu0 %180  ;;  %v175_v24 = vpop.permute.xlu1 %174 }
 0x327   :  { %v183_v25 = vsel %vm28_vm0, %v181_v23, 0.0  ;;  %v177_v26 = vsel %vm28_vm0, %v175_v24, 0.0 }
 0x328   :  { %184 = vadd.xlane.f32.xlu0 %v183_v25  ;;  %178 = vadd.xlane.f32.xlu1 %v177_v26 }
 0x339   :  { %186 = vrot.lane.b32.xlu1 %v441_v31, %s378_s20 }
 0x33d   :  { %192 = vrot.lane.b32.xlu1 %v149_v55, %s378_s20 }
 0x33e   :  { %230 = vrot.lane.b32.xlu0 %v229_v30, %s377_s19 }
 0x341   :  { %198 = vrot.lane.b32.xlu1 %v435_v29, %s378_s20 }
 0x345   :  { %204 = vrot.lane.b32.xlu1 %v449_v33, %s378_s20  ;;  %v211_v33 = vsel %vm28_vm0, %v210_v27, 0.0 }
 0x349   :  { %244 = vrot.lane.b32.xlu1 %v243_v14, %s377_s19 }
 0x34d   :  { %250 = vrot.lane.b32.xlu1 %v229_v30, %s376_s18 }
 0x3b5   :  { %v185_v31 = vpop.xlane.xlu0 %184  ;;  %v179_v34 = vpop.xlane.xlu1 %178 }
 0x3b6   :  { %v286_v35 = vsel %vm256_vm1, %v179_v34, %v185_v31  ;;  %vm303_vm1 = vcmask 222208  }
 0x3b9   :  { %v187_v36 = vpop.permute.xlu1 %186  ;;  %v231_v46 = vpop.permute.xlu0 %230 }
 0x3ba   :  { %v189_v37 = vsel %vm28_vm0, %v187_v36, 0.0  ;;  %v233_v1 = vsel %vm28_vm0, %v231_v46, 0.0 }
 0x3bb   :  { %190 = vadd.xlane.f32.xlu1 %v189_v37 }
 0x3bd   :  { %v193_v29 = vpop.permute.xlu1 %192 }
 0x3be   :  { %v195_v18 = vsel %vm28_vm0, %v193_v29, 0.0 }
 0x3bf   :  { %196 = vadd.xlane.f32.xlu0 %v195_v18 }
 0x3c1   :  { %v199_v38 = vpop.permute.xlu1 %198 }
 0x3c2   :  { %v201_v39 = vsel %vm28_vm0, %v199_v38, 0.0 }
 0x3c3   :  { %212 = vadd.xlane.f32.xlu0 %v211_v33  ;;  %202 = vadd.xlane.f32.xlu1 %v201_v39 }
 0x3c5   :  { %v205_v40 = vpop.permute.xlu1 %204 }
 0x3c6   :  { %v207_v42 = vsel %vm28_vm0, %v205_v40, 0.0 }
 0x3c7   :  { %220 = vadd.xlane.f32.xlu0 %v219_v41  ;;  %208 = vadd.xlane.f32.xlu1 %v207_v42 }
 0x3c9   :  { %v245_v43 = vpop.permute.xlu1 %244 }
 0x3ca   :  { %v247_v45 = vsel %vm28_vm0, %v245_v43, 0.0 }
 0x3cb   :  { %216 = vadd.xlane.f32.xlu1 %v215_v44  ;;  %248 = vadd.xlane.f32.xlu0 %v247_v45 }
 0x3cd   :  { %v251_v16 = vpop.permute.xlu1 %250 }
 0x3ce   :  { %v253_v47 = vsel %vm28_vm0, %v251_v16, 0.0  ;;  %vm301_vm0 = vcmask 130048  }
 0x3cf   :  { %234 = vadd.xlane.f32.xlu1 %v233_v1 }
 0x3d3   :  { %254 = vadd.xlane.f32.xlu1 %v253_v47 }
 0x448   :  { %v191_v48 = vpop.xlane.xlu1 %190 }
 0x449   :  { %v287_v51 = vsel %vm258_vm2, %v286_v35, %v191_v48 }
 0x44c   :  { %v197_v49 = vpop.xlane.xlu0 %196 }
 0x44d   :  { %v288_v52 = vsel %vm260_vm3, %v287_v51, %v197_v49 }
 0x450   :  { %v203_v50 = vpop.xlane.xlu1 %202  ;;  %v213_v53 = vpop.xlane.xlu0 %212 }
 0x451   :  { %v289_v54 = vsel %vm262_vm4, %v288_v52, %v203_v50 }
 0x454   :  { %v209_v55 = vpop.xlane.xlu1 %208  ;;  %v221_v59 = vpop.xlane.xlu0 %220 }
 0x455   :  { %v290_v56 = vsel %vm264_vm5, %v289_v54, %v209_v55 }
 0x456   :  { %v291_v57 = vsel %vm266_vm6, %v290_v56, %v213_v53 }
 0x458   :  { %v217_v58 = vpop.xlane.xlu1 %216  ;;  %v249_v0 = vpop.xlane.xlu0 %248 }
 0x459   :  { %v292_v60 = vsel %vm268_vm7, %v291_v57, %v217_v58 }
 0x45a   :  { %v293_v61 = vsel %vm270_vm8, %v292_v60, %v221_v59 }
 0x45c   :  { %v235_v62 = vpop.xlane.xlu1 %234 }
 0x45d   :  { %v294_v63 = vsel %vm272_vm9, %v293_v61, %v235_v62 }
 0x45e   :  { %v295_v3 = vsel %vm274_vm10, %v294_v63, %v249_v0 }
 0x460   :  { %v255_v2 = vpop.xlane.xlu1 %254 }
 0x461   :  { %v296_v4 = vsel %vm276_vm11, %v295_v3, %v255_v2 }
 0x462   :  { %298 = vrot.lane.b32.xlu0 %v296_v4, %s380_s0 }
 0x4d4   :  { %v299_v5 = vpop.permute.xlu0 %298 }
 0x4d5   :  { %v302_v6 = vsel %vm301_vm0, %v483_v22, %v299_v5 }
 0x4d6   :  { %304 = vst.msk [vmem:[#allocation5] sm:$0x3] %vm303_vm1, %v302_v6 }
 0x4d7   :  { %360 = shalt.err (!%p357_p12)
}
 0x4d8   :  { %s361_s26 = scalar_lea.hbm %s540_s1, 32 }
 0x4d9   :  { %p362_p13 = scmp.ne.s32.totalorder %s540_s1, %s361_s26  ;;  %p365_p0 = scmp.lt.u32.totalorder %s361_s26, %s540_s1 }
 0x4db   :  { %p367_p1 = pnand %p365_p0, %p362_p13 }
 0x4dd   :  { %370 = shalt.err (!%p367_p1)
}
 0x4de   :  { %314 = dma.vmem_to_hbm [thread:$0]  %s312_s22, 32, %s540_s1, [#allocation4]  }
 0x4df   :  { %373 = dma.done.wait [#allocation4], 32  }
 0x4e0   :  { %374 = vsyncadd [#allocation4], 4294967264 }
 0x4e1   :  { %318 = vsyncpa [#allocation3], 1 }
 0x4e2   :  { %319 = vsyncpa [#allocation4], 1 }

</bundles_post_ra>
